<compile_context>
chip_gen: v6e
topology: v6e:2x2x1
jax: 0.10.0
libtpu: 0.0.40
codegen_flags: <defaults>
</compile_context>

<pallas_src>
import numpy as np
import jax
import jax.numpy as jnp
from jax.experimental import pallas as pl
from jax.experimental.pallas import tpu as pltpu

# logical dims
OBS, ACT = 139, 9
IN_DIM = OBS + ACT            # 148
HID = 256                     # trifinger_n_hidden_neurons
NREG = 86                     # ceil(256 / |C3|)
EMLP_OUT = 3 * NREG           # 258
INV_DIM = 2 * NREG            # 172 = len(out_type.irreps)
NC_HID = 256                  # non_constrain_hidden_neurons

# packed dims (lane multiples of 128 where padding is needed)
H2_P = 384                    # 3 blocks of 128 (trivial | 2D comp a | 2D comp b)
INV_P = 256                   # packed invariant-feature dim (|trivial|128 | norms 128)

BT_CAP = 1024                 # batch-tile cap (per review: 512-1024)


def _tiling(batch):
    """Balanced batch tiling.

    - smallest step count such that the tile fits under BT_CAP rows,
    - >=2 steps once B > 128 so both v7x TensorCores get a grid step,
    - tile rounded up to the 8-sublane granule -> padding waste < 8 rows per step.
    """
    n_steps = max(1, -(-batch // BT_CAP))
    if batch > 128:
        n_steps = max(n_steps, 2)
    bt = ((-(-batch // n_steps)) + 7) // 8 * 8
    return max(bt, 8), n_steps


def encoder_kernel(x_ref, w1_ref, b1_ref, w2_ref, b2_ref, w3_ref, b3_ref,
                   w4_ref, b4_ref, out_ref):
    # EMLP hidden layer + ELU (bf16 operands, f32 accumulation)
    x = x_ref[...].astype(jnp.bfloat16)                                  # [BT, 148]
    h1 = jnp.dot(x, w1_ref[...], preferred_element_type=jnp.float32) + b1_ref[...]
    # ELU. TODO(synk): use jnp.expm1 once Mosaic exposes it; exp(h1)-1 differs from
    # torch's expm1 path by <1e-7 at these magnitudes (far below bf16-induced error).
    h1 = jnp.where(h1 > 0, h1, jnp.exp(h1) - 1.0)                        # [BT, 256]

    # EMLP output layer (isotypic basis packed into 3 x 128-lane blocks)
    h2 = jnp.dot(h1.astype(jnp.bfloat16), w2_ref[...],
                 preferred_element_type=jnp.float32) + b2_ref[...]       # [BT, 384]
    triv = h2[:, 0:128]                                                  # trivial irreps
    ca = h2[:, 128:256]                                                  # 2D irrep comp a
    cb = h2[:, 256:384]                                                  # 2D irrep comp b

    # compute_invariant_features: |trivial| and per-2D-irrep L2 norms.
    # Padding lanes are zero end-to-end (W2p/b2p pad cols are 0, W3p pad rows are 0).
    inv = jnp.concatenate([jnp.abs(triv), jnp.sqrt(ca * ca + cb * cb)], axis=-1)

    # normal_block: Linear(172,256)+ReLU as a single K=256 matmul (merged W3).
    h3 = jnp.dot(inv.astype(jnp.bfloat16), w3_ref[...],
                 preferred_element_type=jnp.float32) + b3_ref[...]       # [BT, 256]
    h3 = jnp.maximum(h3, 0.0)

    # head: Linear(256, 1) as VPU mul + lane reduction (MXU has no slack to spare).
    out_ref[...] = jnp.sum(h3 * w4_ref[...], axis=-1, keepdims=True) + b4_ref[...]


def prepare_params(params):
    """Pack logical weights into kernel layouts ONCE (host-side, no per-call XLA ops)."""
    W1, b1, W2, b2, W3, b3, W4, b4 = (np.asarray(p, np.float32) for p in params)

    # EMLP hidden layer: used un-padded ([148, 256])
    b1p = b1.reshape(1, HID)

    # EMLP out layer: columns re-packed into 3 x 128-lane isotypic blocks.
    # The 2-D irrep dims are interleaved (a1,b1,a2,b2,...) in the isotypic basis;
    # de-interleave them here so the kernel's norm is lane-aligned elementwise.
    idx_a = NREG + 2 * np.arange(NREG)
    idx_b = idx_a + 1
    W2p = np.zeros((HID, H2_P), np.float32)
    W2p[:, 0:NREG] = W2[:, 0:NREG]
    W2p[:, 128:128 + NREG] = W2[:, idx_a]
    W2p[:, 256:256 + NREG] = W2[:, idx_b]
    b2p = np.zeros((1, H2_P), np.float32)
    b2p[0, 0:NREG] = b2[0:NREG]
    b2p[0, 128:128 + NREG] = b2[idx_a]
    b2p[0, 256:256 + NREG] = b2[idx_b]

    # normal_block weight: merged [256, 256] (rows 0:86 = |trivial| block,
    # rows 128:214 = 2D-norm block, padded rows zero).
    W3p = np.zeros((INV_P, NC_HID), np.float32)
    W3p[0:NREG, :] = W3[0:NREG, :]
    W3p[128:128 + NREG, :] = W3[NREG:2 * NREG, :]
    b3p = b3.reshape(1, NC_HID)

    # head: row vector for lane-reduction (kept f32), scalar bias
    w4t = W4.reshape(1, NC_HID)
    b4p = b4.reshape(1, 1)

    # Matmul operands go to bf16 (f32 accumulation happens in-kernel); biases stay f32.
    return (jnp.asarray(W1, jnp.bfloat16), jnp.asarray(b1p),
            jnp.asarray(W2p, jnp.bfloat16), jnp.asarray(b2p),
            jnp.asarray(W3p, jnp.bfloat16), jnp.asarray(b3p),
            jnp.asarray(w4t), jnp.asarray(b4p))


def trifinger_inv_critic_encoder(x, prepared):
    """x: [B, 148] float32 (obs ++ actions). Returns [B, 1] float32."""
    W1, b1p, W2p, b2p, W3p, b3p, w4t, b4p = prepared
    B = x.shape[0]
    BT, n_steps = _tiling(B)
    B_pad = BT * n_steps
    if B_pad != B:
        x = jnp.pad(x, ((0, B_pad - B), (0, 0)))

    # TODO(synk): group_utils.process_trifinger_obs is repo-specific; obs passed through
    # (the cat(obs, actions) of the original forward is then the identity on x).

    full = lambda shape: pl.BlockSpec(shape, lambda i: (0, 0))

    out = pl.pallas_call(
        encoder_kernel,
        out_shape=jax.ShapeDtypeStruct((B_pad, 1), jnp.float32),
        grid_spec=pltpu.PrefetchScalarGridSpec(
            num_scalar_prefetch=0,
            grid=(n_steps,),
            in_specs=[
                pl.BlockSpec((BT, IN_DIM), lambda i: (i, 0)),
                full((IN_DIM, HID)), full((1, HID)),
                full((HID, H2_P)), full((1, H2_P)),
                full((INV_P, NC_HID)), full((1, NC_HID)),
                full((1, NC_HID)), full((1, 1)),
            ],
            out_specs=pl.BlockSpec((BT, 1), lambda i: (i, 0)),
        ),
        # "parallel" lets the v7x megacore shard the >=2 batch steps; harmless on 1-TC chips.
        compiler_params=pltpu.CompilerParams(dimension_semantics=("parallel",)),
    )(x, W1, b1p, W2p, b2p, W3p, b3p, w4t, b4p)

    return out[:B]


def reference(x, params):
    """Pure-JAX f32 reference with the same (logical) weights."""
    W1, b1, W2, b2, W3, b3, W4, b4 = params
    obs = x[:, :OBS]           # process_trifinger_obs: identity placeholder
    act = x[:, OBS:]
    inp = jnp.concatenate([obs, act], axis=-1)
    h1 = inp @ W1 + b1
    h1 = jnp.where(h1 > 0, h1, jnp.expm1(h1))               # torch ELU semantics
    h2 = h1 @ W2 + b2                                       # [B, 258] isotypic basis
    triv = h2[:, :NREG]
    pairs = h2[:, NREG:].reshape(-1, NREG, 2)               # interleaved 2-D irreps
    inv = jnp.concatenate(
        [jnp.abs(triv), jnp.sqrt(jnp.sum(pairs * pairs, axis=-1))], axis=-1)
    h3 = jnp.maximum(inv @ W3 + b3, 0.0)
    return h3 @ W4 + b4


def make_params(key):
    ks = jax.random.split(key, 8)
    def lin(kw, fan_in, fan_out):
        s = 1.0 / np.sqrt(fan_in)
        return jax.random.uniform(kw, (fan_in, fan_out), jnp.float32, -s, s)
    W1 = lin(ks[0], IN_DIM, HID)
    b1 = jax.random.uniform(ks[1], (HID,), jnp.float32, -0.05, 0.05)
    W2 = lin(ks[2], HID, EMLP_OUT)
    b2 = jax.random.uniform(ks[3], (EMLP_OUT,), jnp.float32, -0.05, 0.05)
    W3 = lin(ks[4], INV_DIM, NC_HID)
    b3 = jax.random.uniform(ks[5], (NC_HID,), jnp.float32, -0.05, 0.05)
    W4 = lin(ks[6], NC_HID, 1)
    b4 = jax.random.uniform(ks[7], (1,), jnp.float32, -0.05, 0.05)
    return (W1, b1, W2, b2, W3, b3, W4, b4)


if __name__ == "__main__":
    key = jax.random.PRNGKey(0)
    k_x, k_p = jax.random.split(key)
    params = make_params(k_p)
    prepared = prepare_params(params)          # packed + bf16-cast once, reused per call
    fwd = jax.jit(trifinger_inv_critic_encoder)

    # 8: single-tile path; 5: batch-padding path; 260: 2-step balanced-tiling path.
    for B in (8, 5, 260):
        x = jax.random.normal(jax.random.fold_in(k_x, B), (B, IN_DIM), jnp.float32)
        out = jax.block_until_ready(fwd(x, prepared))
        ref = reference(x, params)
        # bf16 matmul operands (f32 accumulation) -> relaxed tolerance per review.
        np.testing.assert_allclose(np.asarray(out), np.asarray(ref),
                                   rtol=2e-2, atol=2e-2)
        assert out.shape == (B, 1)

    print("KERNEL_OK")
</pallas_src>

<mosaic_0001>
module attributes {stable_mosaic.version = 11 : i64} {
  func.func @encoder_kernel(%arg0: i32, %arg1: memref<8x148xf32, #tpu.memory_space<vmem>>, %arg2: memref<148x256xbf16, #tpu.memory_space<vmem>>, %arg3: memref<1x256xf32, #tpu.memory_space<vmem>>, %arg4: memref<256x384xbf16, #tpu.memory_space<vmem>>, %arg5: memref<1x384xf32, #tpu.memory_space<vmem>>, %arg6: memref<256x256xbf16, #tpu.memory_space<vmem>>, %arg7: memref<1x256xf32, #tpu.memory_space<vmem>>, %arg8: memref<1x256xf32, #tpu.memory_space<vmem>>, %arg9: memref<1x1xf32, #tpu.memory_space<vmem>>, %arg10: memref<8x1xf32, #tpu.memory_space<vmem>>) attributes {dimension_semantics = [#tpu.dimension_semantics<parallel>], iteration_bounds = array<i64: 1>, scalar_prefetch = 0 : i64, scratch_operands = 0 : i64, tpu.core_type = #tpu.core_type<tc>, window_params = [{transform_indices = @transform_0, window_bounds = array<i64: 8, 148>}, {pipeline_mode = #tpu.pipeline_mode<synchronous>, transform_indices = @transform_1, window_bounds = array<i64: 148, 256>}, {pipeline_mode = #tpu.pipeline_mode<synchronous>, transform_indices = @transform_2, window_bounds = array<i64: 1, 256>}, {pipeline_mode = #tpu.pipeline_mode<synchronous>, transform_indices = @transform_3, window_bounds = array<i64: 256, 384>}, {pipeline_mode = #tpu.pipeline_mode<synchronous>, transform_indices = @transform_4, window_bounds = array<i64: 1, 384>}, {pipeline_mode = #tpu.pipeline_mode<synchronous>, transform_indices = @transform_5, window_bounds = array<i64: 256, 256>}, {pipeline_mode = #tpu.pipeline_mode<synchronous>, transform_indices = @transform_6, window_bounds = array<i64: 1, 256>}, {pipeline_mode = #tpu.pipeline_mode<synchronous>, transform_indices = @transform_7, window_bounds = array<i64: 1, 256>}, {pipeline_mode = #tpu.pipeline_mode<synchronous>, transform_indices = @transform_8, window_bounds = array<i64: 1, 1>}, {transform_indices = @transform_9, window_bounds = array<i64: 8, 1>}]} {
    %c0 = arith.constant 0 : index
    %c0_0 = arith.constant 0 : index
    %0 = vector.load %arg1[%c0, %c0_0] : memref<8x148xf32, #tpu.memory_space<vmem>>, vector<8x148xf32>
    %1 = arith.truncf %0 : vector<8x148xf32> to vector<8x148xbf16>
    %c0_1 = arith.constant 0 : index
    %c0_2 = arith.constant 0 : index
    %2 = vector.load %arg2[%c0_1, %c0_2] : memref<148x256xbf16, #tpu.memory_space<vmem>>, vector<148x256xbf16>
    %cst = arith.constant dense<0.000000e+00> : vector<8x256xf32>
    %3 = tpu.matmul %1, %2, %cst {dimension_numbers = #tpu.dot_dimension_numbers<[1], [0], [0], [1], [0, 0, 1, 1], [], []>} : vector<8x148xbf16>, vector<148x256xbf16>, vector<8x256xf32> -> vector<8x256xf32>
    %c0_3 = arith.constant 0 : index
    %c0_4 = arith.constant 0 : index
    %4 = vector.load %arg3[%c0_3, %c0_4] : memref<1x256xf32, #tpu.memory_space<vmem>>, vector<1x256xf32>
    %5 = vector.broadcast %4 : vector<1x256xf32> to vector<8x256xf32>
    %6 = arith.addf %3, %5 : vector<8x256xf32>
    %cst_5 = arith.constant 0.000000e+00 : f32
    %7 = vector.broadcast %cst_5 : f32 to vector<8x256xf32>
    %8 = arith.cmpf ogt, %6, %7 : vector<8x256xf32>
    %9 = math.exp %6 : vector<8x256xf32>
    %cst_6 = arith.constant 1.000000e+00 : f32
    %10 = vector.broadcast %cst_6 : f32 to vector<8x256xf32>
    %11 = arith.subf %9, %10 : vector<8x256xf32>
    %12 = arith.select %8, %6, %11 : vector<8x256xi1>, vector<8x256xf32>
    %13 = arith.truncf %12 : vector<8x256xf32> to vector<8x256xbf16>
    %c0_7 = arith.constant 0 : index
    %c0_8 = arith.constant 0 : index
    %14 = vector.load %arg4[%c0_7, %c0_8] : memref<256x384xbf16, #tpu.memory_space<vmem>>, vector<256x384xbf16>
    %cst_9 = arith.constant dense<0.000000e+00> : vector<8x384xf32>
    %15 = tpu.matmul %13, %14, %cst_9 {dimension_numbers = #tpu.dot_dimension_numbers<[1], [0], [0], [1], [0, 0, 1, 1], [], []>} : vector<8x256xbf16>, vector<256x384xbf16>, vector<8x384xf32> -> vector<8x384xf32>
    %c0_10 = arith.constant 0 : index
    %c0_11 = arith.constant 0 : index
    %16 = vector.load %arg5[%c0_10, %c0_11] : memref<1x384xf32, #tpu.memory_space<vmem>>, vector<1x384xf32>
    %17 = vector.broadcast %16 : vector<1x384xf32> to vector<8x384xf32>
    %18 = arith.addf %15, %17 : vector<8x384xf32>
    %19 = vector.extract_strided_slice %18 {offsets = [0, 0], sizes = [8, 128], strides = [1, 1]} : vector<8x384xf32> to vector<8x128xf32>
    %20 = vector.extract_strided_slice %18 {offsets = [0, 128], sizes = [8, 128], strides = [1, 1]} : vector<8x384xf32> to vector<8x128xf32>
    %21 = vector.extract_strided_slice %18 {offsets = [0, 256], sizes = [8, 128], strides = [1, 1]} : vector<8x384xf32> to vector<8x128xf32>
    %22 = math.absf %19 : vector<8x128xf32>
    %23 = arith.mulf %20, %20 : vector<8x128xf32>
    %24 = arith.mulf %21, %21 : vector<8x128xf32>
    %25 = arith.addf %23, %24 : vector<8x128xf32>
    %26 = math.sqrt %25 : vector<8x128xf32>
    %27 = tpu.concatenate %22, %26 in 1 : vector<8x128xf32>, vector<8x128xf32> -> vector<8x256xf32>
    %28 = arith.truncf %27 : vector<8x256xf32> to vector<8x256xbf16>
    %c0_12 = arith.constant 0 : index
    %c0_13 = arith.constant 0 : index
    %29 = vector.load %arg6[%c0_12, %c0_13] : memref<256x256xbf16, #tpu.memory_space<vmem>>, vector<256x256xbf16>
    %cst_14 = arith.constant dense<0.000000e+00> : vector<8x256xf32>
    %30 = tpu.matmul %28, %29, %cst_14 {dimension_numbers = #tpu.dot_dimension_numbers<[1], [0], [0], [1], [0, 0, 1, 1], [], []>} : vector<8x256xbf16>, vector<256x256xbf16>, vector<8x256xf32> -> vector<8x256xf32>
    %c0_15 = arith.constant 0 : index
    %c0_16 = arith.constant 0 : index
    %31 = vector.load %arg7[%c0_15, %c0_16] : memref<1x256xf32, #tpu.memory_space<vmem>>, vector<1x256xf32>
    %32 = vector.broadcast %31 : vector<1x256xf32> to vector<8x256xf32>
    %33 = arith.addf %30, %32 : vector<8x256xf32>
    %cst_17 = arith.constant 0.000000e+00 : f32
    %34 = vector.broadcast %cst_17 : f32 to vector<8x256xf32>
    %35 = arith.maximumf %33, %34 : vector<8x256xf32>
    %c0_18 = arith.constant 0 : index
    %c0_19 = arith.constant 0 : index
    %36 = vector.load %arg8[%c0_18, %c0_19] : memref<1x256xf32, #tpu.memory_space<vmem>>, vector<1x256xf32>
    %37 = vector.broadcast %36 : vector<1x256xf32> to vector<8x256xf32>
    %38 = arith.mulf %35, %37 : vector<8x256xf32>
    %cst_20 = arith.constant dense<0.000000e+00> : vector<8xf32>
    %39 = vector.multi_reduction <add>, %38, %cst_20 [1] : vector<8x256xf32> to vector<8xf32>
    %40 = vector.shape_cast %39 : vector<8xf32> to vector<8x1xf32>
    %c0_21 = arith.constant 0 : index
    %c0_22 = arith.constant 0 : index
    %41 = vector.load %arg9[%c0_21, %c0_22] : memref<1x1xf32, #tpu.memory_space<vmem>>, vector<1x1xf32>
    %42 = vector.broadcast %41 : vector<1x1xf32> to vector<8x1xf32>
    %43 = arith.addf %40, %42 : vector<8x1xf32>
    %c0_23 = arith.constant 0 : index
    %c0_24 = arith.constant 0 : index
    %44 = vector.load %arg10[%c0_23, %c0_24] : memref<8x1xf32, #tpu.memory_space<vmem>>, vector<8x1xf32>
    tpu.vector_store %arg10[%c0_23, %c0_24], %43 {strides = array<i32>} : memref<8x1xf32, #tpu.memory_space<vmem>>, vector<8x1xf32>,
    return
  }
  func.func @transform_0(%arg0: i32) -> (i32, i32) {
    %c0_i32 = arith.constant 0 : i32
    %c0_i32_0 = arith.constant 0 : i32
    return %arg0, %c0_i32 : i32, i32
  }
  func.func @transform_1(%arg0: i32) -> (i32, i32) {
    %c0_i32 = arith.constant 0 : i32
    %c0_i32_0 = arith.constant 0 : i32
    %c0_i32_1 = arith.constant 0 : i32
    return %c0_i32, %c0_i32_0 : i32, i32
  }
  func.func @transform_2(%arg0: i32) -> (i32, i32) {
    %c0_i32 = arith.constant 0 : i32
    %c0_i32_0 = arith.constant 0 : i32
    %c0_i32_1 = arith.constant 0 : i32
    return %c0_i32, %c0_i32_0 : i32, i32
  }
  func.func @transform_3(%arg0: i32) -> (i32, i32) {
    %c0_i32 = arith.constant 0 : i32
    %c0_i32_0 = arith.constant 0 : i32
    %c0_i32_1 = arith.constant 0 : i32
    return %c0_i32, %c0_i32_0 : i32, i32
  }
  func.func @transform_4(%arg0: i32) -> (i32, i32) {
    %c0_i32 = arith.constant 0 : i32
    %c0_i32_0 = arith.constant 0 : i32
    %c0_i32_1 = arith.constant 0 : i32
    return %c0_i32, %c0_i32_0 : i32, i32
  }
  func.func @transform_5(%arg0: i32) -> (i32, i32) {
    %c0_i32 = arith.constant 0 : i32
    %c0_i32_0 = arith.constant 0 : i32
    %c0_i32_1 = arith.constant 0 : i32
    return %c0_i32, %c0_i32_0 : i32, i32
  }
  func.func @transform_6(%arg0: i32) -> (i32, i32) {
    %c0_i32 = arith.constant 0 : i32
    %c0_i32_0 = arith.constant 0 : i32
    %c0_i32_1 = arith.constant 0 : i32
    return %c0_i32, %c0_i32_0 : i32, i32
  }
  func.func @transform_7(%arg0: i32) -> (i32, i32) {
    %c0_i32 = arith.constant 0 : i32
    %c0_i32_0 = arith.constant 0 : i32
    %c0_i32_1 = arith.constant 0 : i32
    return %c0_i32, %c0_i32_0 : i32, i32
  }
  func.func @transform_8(%arg0: i32) -> (i32, i32) {
    %c0_i32 = arith.constant 0 : i32
    %c0_i32_0 = arith.constant 0 : i32
    %c0_i32_1 = arith.constant 0 : i32
    return %c0_i32, %c0_i32_0 : i32, i32
  }
  func.func @transform_9(%arg0: i32) -> (i32, i32) {
    %c0_i32 = arith.constant 0 : i32
    %c0_i32_0 = arith.constant 0 : i32
    return %arg0, %c0_i32 : i32, i32
  }
}

</mosaic_0001>

<bundles_post_ra>
// kernel: trifinger_inv_critic_encoder.1
= control target key start
LH: loop header
LB: loop body
LE: loop exit
PB: predicated region body
PF: predicated region fallthrough
CT: control target
= control target key end

     0   :  { %s1473_s0 = inlined_call_operand.hbm [shape: f32[8,148], index: 0, kind: input, shape index: {}]   ;;  %s1474_s1 = inlined_call_operand.hbm [shape: bf16[148,256], index: 1, kind: input, shape index: {}]   ;;  %s1475_s2 = inlined_call_operand.vmem [shape: f32[1,256], index: 2, kind: input, shape index: {}]   ;;  %s1476_s3 = inlined_call_operand.hbm [shape: bf16[256,384], index: 3, kind: input, shape index: {}]   ;;  %s1477_s4 = inlined_call_operand.vmem [shape: f32[1,384], index: 4, kind: input, shape index: {}]   ;;  %s1478_s5 = inlined_call_operand.hbm [shape: bf16[256,256], index: 5, kind: input, shape index: {}]   ;;  %s1479_s6 = inlined_call_operand.vmem [shape: f32[1,256], index: 6, kind: input, shape index: {}]   ;;  %s1480_s7 = inlined_call_operand.vmem [shape: f32[1,256], index: 7, kind: input, shape index: {}]   ;;  %s1481_s8 = inlined_call_operand.<no memory space> [shape: f32[1,1], index: 8, kind: input, shape index: {}]   ;;  %s1482_s9 = inlined_call_operand.vmem [shape: f32[8,1], index: 9, kind: output, shape index: {}]  }
   0x1   :  { %v14_v0 = vstv %s1481_s8 }
   0x2   :  { %15 = vst [vmem:[#allocation2] sm:$0x1] %v14_v0 }
   0x3   :  { %16 = vsyncpa [#allocation4], 0 }
   0x4   :  { %17 = vsyncpa [#allocation6], 0 }
   0x5   :  { %18 = vsyncpa [#allocation9], 0  ;;  %s1362_s11 = smov [#allocation5]  }
   0x6   :  { %s34_s12 = sshll.u32 %s1362_s11, 4  ;;  %s35_s12 = int_to_ptr.vmem [resolvable:$true] %s34_s12 }
   0x7   :  { %s1284_s13 = scalar_lea.vmem %s35_s12, 2432  ;;  %p1289_p1 = scmp.lt.s32.totalorder %s35_s12, %s35_s12 }
   0x8   :  { %p1285_p0 = scmp.ne.s32.totalorder %s35_s12, %s1284_s13  ;;  %p1290_p2 = scmp.lt.s32.totalorder %s1284_s13, %s1284_s13 }
   0xa   :  { %p1291_p3 = por %p1290_p2, %p1289_p1 }
   0xc   :  { %p1292_p4 = pnand %p1291_p3, %p1285_p0 }
   0xe   :  { %1295 = shalt.err (!%p1292_p4)
}
   0xf   :  { %s1363_s14 = smov 128   ;;  %s1364_s15 = smov 8  }
  0x10   :  { %40 = dma.hbm_to_vmem [thread:$0]  %s1474_s1, 2432, %s35_s12, [#allocation6], %s1363_s14, %s1363_s14, %s1364_s15  }
  0x11   :  { %s1365_s17 = smov [#allocation3]   ;;  %s1366_s19 = smov [#allocation7]  }
  0x12   :  { %s25_s18 = sshll.u32 %s1365_s17, 4  ;;  %s48_s20 = sshll.u32 %s1366_s19, 4  ;;  %s26_s18 = int_to_ptr.vmem [resolvable:$true] %s25_s18  ;;  %s49_s20 = int_to_ptr.vmem [resolvable:$true] %s48_s20 }
  0x13   :  { %s1304_s21 = scalar_lea.vmem %s26_s18, 256  ;;  %p1309_p6 = scmp.lt.s32.totalorder %s26_s18, %s26_s18 }
  0x14   :  { %p1305_p5 = scmp.ne.s32.totalorder %s26_s18, %s1304_s21  ;;  %p1310_p7 = scmp.lt.s32.totalorder %s1304_s21, %s1304_s21 }
  0x16   :  { %p1311_p8 = por %p1310_p7, %p1309_p6 }
  0x18   :  { %p1312_p9 = pnand %p1311_p8, %p1305_p5 }
  0x1a   :  { %1315 = shalt.err (!%p1312_p9)
}
  0x1b   :  { %28 = dma.hbm_to_vmem [thread:$0]  %s1473_s0, 256, %s26_s18, [#allocation4]  }
  0x1c   :  { %s1324_s24 = scalar_lea.vmem %s49_s20, 6144  ;;  %p1329_p11 = scmp.lt.s32.totalorder %s49_s20, %s49_s20 }
  0x1d   :  { %p1325_p10 = scmp.ne.s32.totalorder %s49_s20, %s1324_s24  ;;  %p1330_p12 = scmp.lt.s32.totalorder %s1324_s24, %s1324_s24 }
  0x1f   :  { %p1331_p13 = por %p1330_p12, %p1329_p11 }
  0x21   :  { %p1332_p0 = pnand %p1331_p13, %p1325_p10 }
  0x23   :  { %1335 = shalt.err (!%p1332_p0)
}
  0x24   :  { %s1367_s1 = smov 192   ;;  %s1368_s25 = smov 12  }
  0x25   :  { %54 = dma.hbm_to_vmem [thread:$0]  %s1476_s3, 6144, %s49_s20, [#allocation6], %s1367_s1, %s1367_s1, %s1368_s25  }
  0x26   :  { %s1369_s28 = smov [#allocation8]  }
  0x27   :  { %s62_s29 = sshll.u32 %s1369_s28, 4  ;;  %s63_s29 = int_to_ptr.vmem [resolvable:$true] %s62_s29 }
  0x28   :  { %s1344_s30 = scalar_lea.vmem %s63_s29, 4096  ;;  %p1349_p2 = scmp.lt.s32.totalorder %s63_s29, %s63_s29 }
  0x29   :  { %p1345_p1 = scmp.ne.s32.totalorder %s63_s29, %s1344_s30  ;;  %p1350_p3 = scmp.lt.s32.totalorder %s1344_s30, %s1344_s30 }
  0x2b   :  { %p1351_p4 = por %p1350_p3, %p1349_p2 }
  0x2d   :  { %p1352_p5 = pnand %p1351_p4, %p1345_p1 }
  0x2f   :  { %1355 = shalt.err (!%p1352_p5)
}
  0x30   :  { %68 = dma.hbm_to_vmem [thread:$0]  %s1478_s5, 4096, %s63_s29, [#allocation9], %s1363_s14, %s1363_s14, %s1364_s15  }
  0x31   :  { %1356 = dma.done.wait [#allocation4], 256  }
  0x32   :  { %1357 = vsyncadd [#allocation4], 4294967040 }
  0x33   :  { %1358 = dma.done.wait [#allocation6], 8576  }
  0x34   :  { %1359 = vsyncadd [#allocation6], 4294958720 }
  0x35   :  { %1360 = dma.done.wait [#allocation9], 4096  }
  0x36   :  { %1361 = vsyncadd [#allocation9], 4294963200  ;;  %v1129_v1 = vld [vmem:[#allocation5 + $0x74] ss:$8 sps:$4 sm:$0xff]   ;;  %v1131_v2 = vld [vmem:[#allocation5 + $0x70] ss:$8 sps:$4 sm:$0xff]  }
  0x37   :  { %229 = vmatprep.subr.bf16.mxu0 %v1129_v1  ;;  %v1132_v3 = vld [vmem:[#allocation5 + $0x64] ss:$8 sps:$4 sm:$0xff]   ;;  %v1134_v4 = vld [vmem:[#allocation5 + $0x60] ss:$8 sps:$4 sm:$0xff]   ;;  %v1135_v5 = vld [vmem:[#allocation5 + $0x54] ss:$8 sps:$4 sm:$0xff]  }
  0x38   :  { %230 = vmatpush1.bf16.msra.mxu0 %v1131_v2  ;;  %v1137_v6 = vld [vmem:[#allocation5 + $0x50] ss:$8 sps:$4 sm:$0xff]   ;;  %v1138_v7 = vld [vmem:[#allocation5 + $0x44] ss:$8 sps:$4 sm:$0xff]   ;;  %v1140_v8 = vld [vmem:[#allocation5 + $0x40] ss:$8 sps:$4 sm:$0xff]  }
  0x39   :  { %231 = vmatprep.subr.bf16.mxu0 %v1132_v3  ;;  %v1141_v9 = vld [vmem:[#allocation5 + $0x34] ss:$8 sps:$4 sm:$0xff]   ;;  %vm218_vm0 = vcmask 162816   ;;  %v1158_v12 = vld [vmem:[#allocation7 + $0xac] ss:$12 sps:$4 sm:$0xff]   ;;  %vm222_vm1 = vcmask 1041408  }
  0x3a   :  { %v89_v10 = vld [vmem:[#allocation3 + $0x8] sm:$0xff]  ;;  %v1160_v13 = vld [vmem:[#allocation7 + $0xa8] ss:$12 sps:$4 sm:$0xff]   ;;  %619 = vmatprep.subr.bf16.mxu1 %v1158_v12  ;;  %v1163_v17 = vld [vmem:[#allocation7 + $0x90] ss:$12 sps:$4 sm:$0xff]   ;;  %v113_v12 = vlaneseq  ;;  %vm985_vm6 = vcmask 7168  }
  0x3b   :  { %v91_v11 = vpack.c.bf16 %v89_v10, %v89_v10  ;;  %v1143_v14 = vld [vmem:[#allocation5 + $0x30] ss:$8 sps:$4 sm:$0xff]   ;;  %v1144_v16 = vld [vmem:[#allocation5 + $0x24] ss:$8 sps:$4 sm:$0xff]   ;;  %620 = vmatpush1.bf16.msra.mxu1 %v1160_v13  ;;  %v1164_v18 = vld [vmem:[#allocation7 + $0x7c] ss:$12 sps:$4 sm:$0xff]  }
  0x3c   :  { %232 = vmatpush1.bf16.msra.mxu0 %v1134_v4  ;;  %v1161_v15 = vld [vmem:[#allocation7 + $0x94] ss:$12 sps:$4 sm:$0xff]   ;;  %v1146_v19 = vld [vmem:[#allocation5 + $0x20] ss:$8 sps:$4 sm:$0xff]   ;;  %v1147_v20 = vld [vmem:[#allocation5 + $0x14] ss:$8 sps:$4 sm:$0xff]  }
  0x3d   :  { %233 = vmatprep.subr.bf16.mxu0 %v1135_v5  ;;  %1015 = vmatprep.mubr.msk.bf16.mxu0 %vm218_vm0, %v91_v11  ;;  %v1166_v21 = vld [vmem:[#allocation7 + $0x78] ss:$12 sps:$4 sm:$0xff]   ;;  %v1150_v24 = vld [vmem:[#allocation5 + $0x4] ss:$8 sps:$4 sm:$0xff]   ;;  %v1152_v28 = vld [vmem:[#allocation5] ss:$8 sps:$4 sm:$0xff]  }
  0x3e   :  { %621 = vmatprep.subr.bf16.mxu1 %v1161_v15  ;;  %v1167_v22 = vld [vmem:[#allocation7 + $0x64] ss:$12 sps:$4 sm:$0xff]   ;;  %v1149_v23 = vld [vmem:[#allocation5 + $0x10] ss:$8 sps:$4 sm:$0xff]   ;;  %v1172_v31 = vld [vmem:[#allocation7 + $0x48] ss:$12 sps:$4 sm:$0xff]  }
  0x3f   :  { %622 = vmatpush1.bf16.msra.mxu1 %v1163_v17  ;;  %v110_v25 = vld [vmem:[#allocation5 + $0x90] sm:$0x33]  ;;  %v1169_v26 = vld [vmem:[#allocation7 + $0x60] ss:$12 sps:$4 sm:$0xff]   ;;  %v1157_v37 = vld [vmem:[#allocation5 + $0x80] ss:$8 sps:$4 sm:$0xff]  }
  0x40   :  { %234 = vmatpush1.bf16.msra.mxu0 %v1137_v6  ;;  %623 = vmatprep.subr.bf16.mxu1 %v1164_v18  ;;  %v1170_v27 = vld [vmem:[#allocation7 + $0x4c] ss:$12 sps:$4 sm:$0xff]   ;;  %v1013_v29 = vcombine.high %v110_v25, %v110_v25  ;;  %v1012_v30 = vcombine.low %v110_v25, %v110_v25  ;;  %v1173_v32 = vld [vmem:[#allocation7 + $0x34] ss:$12 sps:$4 sm:$0xff]   ;;  %v1175_v34 = vld [vmem:[#allocation7 + $0x30] ss:$12 sps:$4 sm:$0xff]  }
  0x41   :  { %235 = vmatprep.subr.bf16.mxu0 %v1138_v7  ;;  %v1155_v33 = vld [vmem:[#allocation5 + $0x84] ss:$8 sps:$4 sm:$0xff]   ;;  %v1176_v36 = vld [vmem:[#allocation7 + $0x1c] ss:$12 sps:$4 sm:$0xff]   ;;  %v1178_v40 = vld [vmem:[#allocation7 + $0x18] ss:$12 sps:$4 sm:$0xff]  }
  0x42   :  { %v224_v35 = vsel %vm222_vm1, %v1012_v30, 0  ;;  %v88_v38 = vld [vmem:[#allocation3] sm:$0xff]  ;;  %v1179_v41 = vld [vmem:[#allocation7 + $0x4] ss:$12 sps:$4 sm:$0xff]   ;;  %v1181_v45 = vld [vmem:[#allocation7] ss:$12 sps:$4 sm:$0xff]  }
  0x43   :  { %624 = vmatpush1.bf16.msra.mxu1 %v1166_v21  ;;  %v1184_v39 = vld [vmem:[#allocation7 + $0x170] ss:$12 sps:$4 sm:$0xff]   ;;  %v90_v43 = vpack.c.bf16 %v88_v38, %v88_v38  ;;  %v1189_v44 = vld [vmem:[#allocation7 + $0x158] ss:$12 sps:$4 sm:$0xff]   ;;  %v1185_v47 = vld [vmem:[#allocation7 + $0x168] ss:$12 sps:$4 sm:$0xff]  }
  0x44   :  { %236 = vmatpush1.bf16.msra.mxu0 %v1140_v8  ;;  %625 = vmatprep.subr.bf16.mxu1 %v1167_v22  ;;  %v1186_v42 = vld [vmem:[#allocation7 + $0xb0] ss:$12 sps:$4 sm:$0xff]   ;;  %v1182_v46 = vld [vmem:[#allocation7 + $0x16c] ss:$12 sps:$4 sm:$0xff]   ;;  %v1187_v48 = vld [vmem:[#allocation7 + $0x154] ss:$12 sps:$4 sm:$0xff]  }
  0x45   :  { %237 = vmatprep.subr.bf16.mxu0 %v1141_v9  ;;  %v1190_v49 = vld [vmem:[#allocation7 + $0x150] ss:$12 sps:$4 sm:$0xff]   ;;  %v1191_v50 = vld [vmem:[#allocation7 + $0x98] ss:$12 sps:$4 sm:$0xff]   ;;  %v1194_v52 = vld [vmem:[#allocation7 + $0x140] ss:$12 sps:$4 sm:$0xff]  }
  0x46   :  { %v1192_v51 = vld [vmem:[#allocation7 + $0x13c] ss:$12 sps:$4 sm:$0xff]   ;;  %v1195_v53 = vld [vmem:[#allocation7 + $0x138] ss:$12 sps:$4 sm:$0xff]   ;;  %v1196_v54 = vld [vmem:[#allocation7 + $0x80] ss:$12 sps:$4 sm:$0xff]  }
  0x47   :  { %626 = vmatpush1.bf16.msra.mxu1 %v1169_v26  ;;  %v1197_v55 = vld [vmem:[#allocation7 + $0x124] ss:$12 sps:$4 sm:$0xff]   ;;  %v1199_v56 = vld [vmem:[#allocation7 + $0x128] ss:$12 sps:$4 sm:$0xff]   ;;  %v1200_v57 = vld [vmem:[#allocation7 + $0x120] ss:$12 sps:$4 sm:$0xff]  }
  0x48   :  { %238 = vmatpush1.bf16.msra.mxu0 %v1143_v14  ;;  %627 = vmatprep.subr.bf16.mxu1 %v1170_v27  ;;  %v1201_v58 = vld [vmem:[#allocation7 + $0x68] ss:$12 sps:$4 sm:$0xff]   ;;  %v1202_v59 = vld [vmem:[#allocation7 + $0x10c] ss:$12 sps:$4 sm:$0xff]   ;;  %v1204_v60 = vld [vmem:[#allocation7 + $0x110] ss:$12 sps:$4 sm:$0xff]  }
  0x49   :  { %239 = vmatprep.subr.bf16.mxu0 %v1144_v16  ;;  %v1205_v61 = vld [vmem:[#allocation7 + $0x108] ss:$12 sps:$4 sm:$0xff]   ;;  %v1206_v62 = vld [vmem:[#allocation7 + $0x50] ss:$12 sps:$4 sm:$0xff]   ;;  %v1209_v0 = vld [vmem:[#allocation7 + $0xf8] ss:$12 sps:$4 sm:$0xff]  }
  0x4a   :  { %v1207_v63 = vld [vmem:[#allocation7 + $0xf4] ss:$12 sps:$4 sm:$0xff]   ;;  %v1210_v1 = vld [vmem:[#allocation7 + $0xf0] ss:$12 sps:$4 sm:$0xff]   ;;  %v1211_v2 = vld [vmem:[#allocation7 + $0x38] ss:$12 sps:$4 sm:$0xff]  }
  0x4b   :  { %628 = vmatpush1.bf16.msra.mxu1 %v1172_v31  ;;  %v1212_v3 = vld [vmem:[#allocation7 + $0xdc] ss:$12 sps:$4 sm:$0xff]   ;;  %v1214_v4 = vld [vmem:[#allocation7 + $0xe0] ss:$12 sps:$4 sm:$0xff]   ;;  %v1215_v5 = vld [vmem:[#allocation7 + $0xd8] ss:$12 sps:$4 sm:$0xff]  }
  0x4c   :  { %240 = vmatpush1.bf16.msra.mxu0 %v1146_v19  ;;  %629 = vmatprep.subr.bf16.mxu1 %v1173_v32  ;;  %v1216_v6 = vld [vmem:[#allocation7 + $0x20] ss:$12 sps:$4 sm:$0xff]   ;;  %v1217_v7 = vld [vmem:[#allocation7 + $0xc4] ss:$12 sps:$4 sm:$0xff]   ;;  %v1219_v8 = vld [vmem:[#allocation7 + $0xc8] ss:$12 sps:$4 sm:$0xff]  }
  0x4d   :  { %241 = vmatprep.subr.bf16.mxu0 %v1147_v20  ;;  %v1220_v9 = vld [vmem:[#allocation7 + $0xc0] ss:$12 sps:$4 sm:$0xff]   ;;  %v1221_v10 = vld [vmem:[#allocation7 + $0x8] ss:$12 sps:$4 sm:$0xff]   ;;  %v1441_v13 = vshrl.u32 %v113_v12, 7 }
  0x4e   :  { %v1224_v11 = vld [vmem:[#allocation8 + $0x74] ss:$8 sps:$4 sm:$0xff]  }
  0x4f   :  { %630 = vmatpush1.bf16.msra.mxu1 %v1175_v34  ;;  %v1444_v14 = vsub.s32 0, %v1441_v13  ;;  %v111_v15 = vld [vmem:[%s1475_s2] sm:$0x3]  ;;  %v1450_v16 = vsub.s32 1, %v1441_v13 }
  0x50   :  { %242 = vmatpush1.bf16.msra.mxu0 %v1149_v23  ;;  %631 = vmatprep.subr.bf16.mxu1 %v1176_v36  ;;  %v1222_v34 = vld [vmem:[#allocation8 + $0x70] ss:$8 sps:$4 sm:$0xff]   ;;  %v1227_v36 = vld [vmem:[#allocation8 + $0x64] ss:$8 sps:$4 sm:$0xff]   ;;  %v1230_v38 = vld [vmem:[#allocation8 + $0x54] ss:$8 sps:$4 sm:$0xff]  }
  0x51   :  { %243 = vmatprep.subr.bf16.mxu0 %v1150_v24  ;;  %v116_v17 = vrot.slane %v111_v15, %v1444_v14  ;;  %v120_v18 = vrot.slane %v111_v15, %v1450_v16 }
  0x53   :  { %632 = vmatpush1.bf16.msra.mxu1 %v1178_v40  ;;  %v1233_v40 = vld [vmem:[#allocation8 + $0x44] ss:$8 sps:$4 sm:$0xff]  }
  0x54   :  { %244 = vmatpush1.bf16.msra.mxu0 %v1152_v28  ;;  %633 = vmatprep.subr.bf16.mxu1 %v1179_v41  ;;  %v1231_v41 = vld [vmem:[#allocation8 + $0x40] ss:$8 sps:$4 sm:$0xff]  }
  0x55   :  { %1014 = vmatprep.subr.msk.bf16.mxu0 %vm222_vm1, %v1013_v29 }
  0x57   :  { %634 = vmatpush1.bf16.msra.mxu1 %v1181_v45  ;;  %v1237_v45 = vld [vmem:[#allocation8 + $0x20] ss:$8 sps:$4 sm:$0xff]  }
  0x58   :  { %258 = vmatpush2.bf16.msra.mxu0 %v224_v35  ;;  %635 = vmatprep.subr.bf16.mxu1 %v1182_v46  ;;  %v1242_v46 = vld [vmem:[#allocation8 + $0x14] ss:$8 sps:$4 sm:$0xff]  }
  0x59   :  { %259 = vmatprep.subr.bf16.mxu0 %v1155_v33 }
  0x5b   :  { %636 = vmatpush2.bf16.msra.mxu1 %v1185_v47  ;;  %v1240_v47 = vld [vmem:[#allocation8 + $0x10] ss:$8 sps:$4 sm:$0xff]  }
  0x5c   :  { %260 = vmatpush2.bf16.msra.mxu0 %v1157_v37  ;;  %637 = vmatprep.subr.bf16.mxu1 %v1187_v48  ;;  %v1225_v37 = vld [vmem:[#allocation8 + $0x60] ss:$8 sps:$4 sm:$0xff]   ;;  %v1245_v48 = vld [vmem:[#allocation8 + $0x4] ss:$8 sps:$4 sm:$0xff]  }
  0x5d   :  { %1099 = vmatprep.subr.bf16.mxu0 %v1184_v39  ;;  %v1228_v39 = vld [vmem:[#allocation8 + $0x50] ss:$8 sps:$4 sm:$0xff]  }
  0x5f   :  { %262 = vmatmul.mubr.bf16.vlgmr.msra.gmra.mxu0 %v90_v43  ;;  %638 = vmatpush2.bf16.msra.mxu1 %v1190_v49  ;;  %v1234_v43 = vld [vmem:[#allocation8 + $0x30] ss:$8 sps:$4 sm:$0xff]   ;;  %v1243_v49 = vld [vmem:[#allocation8] ss:$8 sps:$4 sm:$0xff]  }
  0x60   :  { %1100 = vmatpush3.bf16.msra.mxu0 %v1186_v42  ;;  %639 = vmatprep.subr.bf16.mxu1 %v1192_v51  ;;  %v1236_v42 = vld [vmem:[#allocation8 + $0x34] ss:$8 sps:$4 sm:$0xff]   ;;  %v1246_v51 = vld [vmem:[#allocation8 + $0xf0] ss:$8 sps:$4 sm:$0xff]  }
  0x61   :  { %1101 = vmatprep.subr.bf16.mxu0 %v1189_v44  ;;  %v1239_v44 = vld [vmem:[#allocation8 + $0x24] ss:$8 sps:$4 sm:$0xff]  }
  0x63   :  { %640 = vmatpush2.bf16.msra.mxu1 %v1195_v53  ;;  %v1249_v53 = vld [vmem:[#allocation8 + $0xe0] ss:$8 sps:$4 sm:$0xff]  }
  0x64   :  { %1102 = vmatpush3.bf16.msra.mxu0 %v1191_v50  ;;  %641 = vmatprep.subr.bf16.mxu1 %v1197_v55  ;;  %v1248_v50 = vld [vmem:[#allocation8 + $0xf4] ss:$8 sps:$4 sm:$0xff]   ;;  %v1252_v55 = vld [vmem:[#allocation8 + $0xd0] ss:$8 sps:$4 sm:$0xff]  }
  0x65   :  { %1103 = vmatprep.subr.bf16.mxu0 %v1194_v52  ;;  %v1251_v52 = vld [vmem:[#allocation8 + $0xe4] ss:$8 sps:$4 sm:$0xff]  }
  0x67   :  { %642 = vmatpush2.bf16.msra.mxu1 %v1200_v57  ;;  %v1255_v57 = vld [vmem:[#allocation8 + $0xc0] ss:$8 sps:$4 sm:$0xff]  }
  0x68   :  { %1104 = vmatpush3.bf16.msra.mxu0 %v1196_v54  ;;  %643 = vmatprep.subr.bf16.mxu1 %v1202_v59  ;;  %v1254_v54 = vld [vmem:[#allocation8 + $0xd4] ss:$8 sps:$4 sm:$0xff]   ;;  %v1258_v59 = vld [vmem:[#allocation8 + $0xb0] ss:$8 sps:$4 sm:$0xff]  }
  0x69   :  { %1105 = vmatprep.subr.bf16.mxu0 %v1199_v56  ;;  %v1257_v56 = vld [vmem:[#allocation8 + $0xc4] ss:$8 sps:$4 sm:$0xff]  }
  0x6b   :  { %644 = vmatpush2.bf16.msra.mxu1 %v1205_v61  ;;  %v1261_v61 = vld [vmem:[#allocation8 + $0xa0] ss:$8 sps:$4 sm:$0xff]  }
  0x6c   :  { %1106 = vmatpush3.bf16.msra.mxu0 %v1201_v58  ;;  %645 = vmatprep.subr.bf16.mxu1 %v1207_v63  ;;  %v1260_v58 = vld [vmem:[#allocation8 + $0xb4] ss:$8 sps:$4 sm:$0xff]   ;;  %v1264_v63 = vld [vmem:[#allocation8 + $0x90] ss:$8 sps:$4 sm:$0xff]  }
  0x6d   :  { %1107 = vmatprep.subr.bf16.mxu0 %v1204_v60  ;;  %v1263_v60 = vld [vmem:[#allocation8 + $0xa4] ss:$8 sps:$4 sm:$0xff]  }
  0x6f   :  { %646 = vmatpush2.bf16.msra.mxu1 %v1210_v1  ;;  %v1267_v1 = vld [vmem:[#allocation8 + $0x80] ss:$8 sps:$4 sm:$0xff]  }
  0x70   :  { %1108 = vmatpush3.bf16.msra.mxu0 %v1206_v62  ;;  %647 = vmatprep.subr.bf16.mxu1 %v1212_v3  ;;  %v1266_v62 = vld [vmem:[#allocation8 + $0x94] ss:$8 sps:$4 sm:$0xff]  }
  0x71   :  { %1109 = vmatprep.subr.bf16.mxu0 %v1209_v0  ;;  %v1269_v0 = vld [vmem:[#allocation8 + $0x84] ss:$8 sps:$4 sm:$0xff]   ;;  %v346_v3 = vld [vmem:[%s1477_s4] sm:$0x7] }
  0x73   :  { %648 = vmatpush2.bf16.msra.mxu1 %v1215_v5 }
  0x74   :  { %1110 = vmatpush3.bf16.msra.mxu0 %v1211_v2  ;;  %649 = vmatprep.subr.bf16.mxu1 %v1217_v7  ;;  %v358_v2 = vsub.s32 2, %v1441_v13 }
  0x75   :  { %1111 = vmatprep.subr.bf16.mxu0 %v1214_v4  ;;  %v355_v4 = vrot.slane %v346_v3, %v1450_v16 }
  0x76   :  { %v359_v7 = vrot.slane %v346_v3, %v358_v2 }
  0x77   :  { %650 = vmatpush2.bf16.msra.mxu1 %v1220_v9 }
  0x78   :  { %1112 = vmatpush3.bf16.msra.mxu0 %v1216_v6  ;;  %917 = vmatprep.subr.bf16.mxu1 %v1224_v11 }
  0x79   :  { %1113 = vmatprep.subr.bf16.mxu0 %v1219_v8 }
  0x7c   :  { %1114 = vmatpush3.bf16.msra.mxu0 %v1221_v10 }
 0x11f   :  { %v263_v19 = vpop.f32.mrf.mxu0 }
 0x120   :  { %v264_v20 = vadd.f32 %v263_v19, %v116_v17 }
 0x121   :  { %v265_v21 = vpop.f32.mrf.mxu0 }
 0x122   :  { %v272_v22 = vmul.f32 1.442695, %v264_v20  ;;  %v266_v23 = vadd.f32 %v265_v21, %v120_v18  ;;  %vm270_vm2 = vcmp.gt.f32.partialorder %v264_v20, 0.0 }
 0x123   :  { %v267_v24 = vpop.f32.mrf.mxu0 }
 0x124   :  { %1270 = vpow2.f32 %v272_v22  ;;  %v274_v25 = vmul.f32 1.442695, %v266_v23  ;;  %vm271_vm3 = vcmp.gt.f32.partialorder %v266_v23, 0.0  ;;  %v351_v22 = vrot.slane %v346_v3, %v1444_v14 }
 0x125   :  { %v268_v26 = vpop.f32.mrf.mxu0 }
 0x126   :  { %1272 = vpow2.f32 %v274_v25 }
 0x131   :  { %v1271_v27 = vpop.eup %1270 }
 0x132   :  { %v1016_v28 = vadd.f32 -1.0, %v1271_v27 }
 0x133   :  { %v1273_v29 = vpop.eup %1272 }
 0x134   :  { %v1017_v30 = vadd.f32 -1.0, %v1273_v29  ;;  %v278_v31 = vsel %vm270_vm2, %v264_v20, %v1016_v28 }
 0x135   :  { %v280_v35 = vpack.c.bf16 %v278_v31, %v278_v31 }
 0x136   :  { %v279_v32 = vsel %vm271_vm3, %v266_v23, %v1017_v30 }
 0x137   :  { %v281_v33 = vpack.c.bf16 %v279_v32, %v279_v32  ;;  %v745_v32 = vld [vmem:[%s1479_s6] sm:$0x3] }
 0x139   :  { %651 = vmatprep.mubr.bf16.mxu1 %v281_v33  ;;  %692 = vmatprep.mubr.bf16.mxu0 %v281_v33  ;;  %v750_v33 = vrot.slane %v745_v32, %v1444_v14 }
 0x13a   :  { %652 = vmatmul.mubr.bf16.vlgmr.msra.gmra.mxu1 %v280_v35  ;;  %693 = vmatmul.mubr.bf16.vlgmr.msra.gmra.mxu0 %v280_v35 }
 0x13b   :  { %918 = vmatpush1.bf16.msra.mxu1 %v1222_v34  ;;  %v754_v34 = vrot.slane %v745_v32, %v1450_v16 }
 0x13c   :  { %919 = vmatprep.subr.bf16.mxu1 %v1227_v36  ;;  %v960_v36 = vld [vmem:[%s1480_s7] sm:$0x3] }
 0x13f   :  { %920 = vmatpush1.bf16.msra.mxu1 %v1225_v37 }
 0x140   :  { %921 = vmatprep.subr.bf16.mxu1 %v1230_v38 }
 0x143   :  { %922 = vmatpush1.bf16.msra.mxu1 %v1228_v39 }
 0x144   :  { %923 = vmatprep.subr.bf16.mxu1 %v1233_v40 }
 0x147   :  { %924 = vmatpush1.bf16.msra.mxu1 %v1231_v41  ;;  %v965_v41 = vrot.slane %v960_v36, %v1444_v14 }
 0x148   :  { %925 = vmatprep.subr.bf16.mxu1 %v1236_v42  ;;  %v969_v42 = vrot.slane %v960_v36, %v1450_v16 }
 0x14b   :  { %926 = vmatpush1.bf16.msra.mxu1 %v1234_v43 }
 0x14c   :  { %927 = vmatprep.subr.bf16.mxu1 %v1239_v44 }
 0x14f   :  { %928 = vmatpush1.bf16.msra.mxu1 %v1237_v45 }
 0x150   :  { %929 = vmatprep.subr.bf16.mxu1 %v1242_v46 }
 0x153   :  { %930 = vmatpush1.bf16.msra.mxu1 %v1240_v47 }
 0x154   :  { %931 = vmatprep.subr.bf16.mxu1 %v1245_v48 }
 0x157   :  { %932 = vmatpush1.bf16.msra.mxu1 %v1243_v49  ;;  %v1098_v49 = vld [vmem:[#allocation2] ss:$0 sm:$0xff] }
 0x158   :  { %933 = vmatprep.subr.bf16.mxu1 %v1248_v50 }
 0x15b   :  { %934 = vmatpush2.bf16.msra.mxu1 %v1246_v51 }
 0x15c   :  { %935 = vmatprep.subr.bf16.mxu1 %v1251_v52 }
 0x15f   :  { %936 = vmatpush2.bf16.msra.mxu1 %v1249_v53 }
 0x160   :  { %937 = vmatprep.subr.bf16.mxu1 %v1254_v54 }
 0x163   :  { %938 = vmatpush2.bf16.msra.mxu1 %v1252_v55 }
 0x164   :  { %939 = vmatprep.subr.bf16.mxu1 %v1257_v56 }
 0x167   :  { %940 = vmatpush2.bf16.msra.mxu1 %v1255_v57 }
 0x168   :  { %941 = vmatprep.subr.bf16.mxu1 %v1260_v58 }
 0x16b   :  { %942 = vmatpush2.bf16.msra.mxu1 %v1258_v59 }
 0x16c   :  { %943 = vmatprep.subr.bf16.mxu1 %v1263_v60 }
 0x16f   :  { %944 = vmatpush2.bf16.msra.mxu1 %v1261_v61 }
 0x170   :  { %945 = vmatprep.subr.bf16.mxu1 %v1266_v62 }
 0x173   :  { %946 = vmatpush2.bf16.msra.mxu1 %v1264_v63 }
 0x174   :  { %947 = vmatprep.subr.bf16.mxu1 %v1269_v0 }
 0x177   :  { %948 = vmatpush2.bf16.msra.mxu1 %v1267_v1 }
 0x1fa   :  { %v653_v5 = vpop.f32.mrf.mxu1  ;;  %v1115_v6 = vpop.f32.mrf.mxu0 }
 0x1fb   :  { %v654_v23 = vadd.f32 %v653_v5, %v351_v22 }
 0x1fc   :  { %v655_v8 = vpop.f32.mrf.mxu1  ;;  %v1116_v9 = vpop.f32.mrf.mxu0 }
 0x1fd   :  { %v656_v10 = vadd.f32 %v655_v8, %v355_v4  ;;  %v1117_v11 = vadd.f32 %v1116_v9, %v1115_v6  ;;  %v700_v26 = vand.u32 2147483647, %v654_v23 }
 0x1fe   :  { %v657_v12 = vpop.f32.mrf.mxu1  ;;  %v1118_v15 = vpop.f32.mrf.mxu0 }
 0x1ff   :  { %v695_v17 = vadd.f32 %v1117_v11, %v359_v7  ;;  %v701_v20 = vmul.f32 %v656_v10, %v656_v10  ;;  %v711_v31 = vpack.c.bf16 %v700_v26, %v700_v26 }
 0x200   :  { %v658_v18 = vpop.f32.mrf.mxu1  ;;  %v1119_v19 = vpop.f32.mrf.mxu0 }
 0x201   :  { %v702_v13 = vmul.f32 %v695_v17, %v695_v17 }
 0x203   :  { %v703_v21 = vadd.f32 %v702_v13, %v701_v20 }
 0x205   :  { %1274 = vrsqrt.f32 %v703_v21  ;;  %vm706_vm4 = vcmp.eq.f32.partialorder %v703_v21, inf  ;;  %v709_v27 = vand.u32 2147483648, %v703_v21  ;;  %vm708_vm5 = vcmp.eq.f32.partialorder %v703_v21, 0.0 }
 0x212   :  { %v1275_v24 = vpop.eup %1274 }
 0x213   :  { %v705_v25 = vmul.f32 %v1275_v24, %v703_v21 }
 0x215   :  { %v707_v28 = vsel %vm706_vm4, %v703_v21, %v705_v25 }
 0x216   :  { %v710_v29 = vsel %vm708_vm5, %v709_v27, %v707_v28 }
 0x217   :  { %v712_v30 = vpack.c.bf16 %v710_v29, %v710_v29 }
 0x219   :  { %949 = vmatprep.mubr.bf16.mxu1 %v712_v30 }
 0x21a   :  { %950 = vmatmul.mubr.bf16.vlgmr.msra.gmra.mxu1 %v711_v31 }
 0x2da   :  { %v951_v35 = vpop.f32.mrf.mxu1 }
 0x2db   :  { %v952_v37 = vadd.f32 %v951_v35, %v750_v33 }
 0x2dc   :  { %v953_v38 = vpop.f32.mrf.mxu1 }
 0x2dd   :  { %v958_v39 = vmax.f32 %v952_v37, 0.0  ;;  %v954_v40 = vadd.f32 %v953_v38, %v754_v34 }
 0x2de   :  { %v955_v43 = vpop.f32.mrf.mxu1 }
 0x2df   :  { %v959_v44 = vmax.f32 %v954_v40, 0.0  ;;  %v972_v46 = vmul.f32 %v965_v41, %v958_v39 }
 0x2e0   :  { %v956_v45 = vpop.f32.mrf.mxu1 }
 0x2e1   :  { %v973_v47 = vmul.f32 %v969_v42, %v959_v44 }
 0x2e3   :  { %v974_v48 = vadd.f32 %v973_v47, %v972_v46 }
 0x2e5   :  { %975 = vadd.xlane.f32.xlu0 %v974_v48 }
 0x36e   :  { %v976_v50 = vpop.xlane.xlu0 %975 }
 0x36f   :  { %v984_v51 = vadd.f32 %v1098_v49, %v976_v50 }
 0x371   :  { %986 = vst.msk [vmem:[%s1482_s9] sm:$0xff] %vm985_vm6, %v984_v51 }
 0x372   :  { %991 = vsyncpa [#allocation4], 1 }
 0x373   :  { %992 = vsyncpa [#allocation6], 1 }
 0x374   :  { %993 = vsyncpa [#allocation9], 1 }

</bundles_post_ra>
